<compile_context>
chip_gen: v5e
topology: v5e:2x2
jax: 0.10.0
libtpu: 0.0.40
codegen_flags: <defaults>
</compile_context>

<pallas_src>
import functools
import math

import jax
import jax.numpy as jnp
from jax import lax
from jax.experimental import pallas as pl
from jax.experimental.pallas import tpu as pltpu


# ----------------------------------------------------------------------------
# Device-generation helpers
# ----------------------------------------------------------------------------
def _device_kind():
    try:
        return jax.devices()[0].device_kind.lower()
    except Exception:
        return ""


def _default_feat_dtype():
    kind = _device_kind()
    if ("v6" in kind) or ("v7" in kind) or ("tpu7" in kind) or ("7x" in kind):
        return jnp.bfloat16   # bf16 VPU/EUP: ~2x add/tanh/mul throughput, half VMEM
    return jnp.float32        # v5e and older: no bf16 VPU/EUP -> keep f32


def _vmem_capacity_bytes():
    try:
        return int(pltpu.get_tpu_info().vmem_capacity_bytes)
    except Exception:
        pass
    kind = _device_kind()
    if ("v7" in kind) or ("tpu7" in kind) or ("7x" in kind):
        return 64 << 20
    return 128 << 20


# ----------------------------------------------------------------------------
# Block-size heuristic (VMEM- and megacore-aware)
# ----------------------------------------------------------------------------
def _choose_blocks(B, Lq, Lk, Dq, Dk, Dv, H, feat_bytes, vmem_budget):
    bb_cands = [bb for bb in (8, 4, 2, 1) if B % bb == 0] or [1]
    tq_cands = sorted({t for t in (256, 128, 64, 32, 16, 8)
                       if t < Lq and Lq % t == 0} | {Lq}, reverse=True)

    def footprint(bb, tq):
        blocks = 2 * 4 * (bb * tq * Dq + bb * Lk * Dk + bb * Lk * Dv + bb * tq * Dv)
        weights = 2 * 4 * (Dq * H + Dk * H + H)
        scratch = feat_bytes * (bb * tq * H + bb * Lk * H)
        slab = (2 * feat_bytes + 4) * tq * Lk * H + 3 * 4 * tq * Lk
        return blocks + weights + scratch + slab

    best = None
    for tq in tq_cands:
        for bb in bb_cands:
            if footprint(bb, tq) <= vmem_budget:
                best = (bb, tq)
                break
        if best is not None:
            break
    if best is None:
        best = (1, tq_cands[-1])
    bb, tq = best

    # Megacore / v7x (2 TCs): make sure there are >= 2 parallel grid steps.
    def steps(bb_, tq_):
        return (B // bb_) * (Lq // tq_)

    while steps(bb, tq) < 2:
        smaller_bb = [c for c in bb_cands if c < bb]
        smaller_tq = [c for c in tq_cands if c < tq]
        if smaller_bb:
            bb = smaller_bb[0]
        elif smaller_tq:
            tq = smaller_tq[0]
        else:
            break
    return bb, tq, footprint(bb, tq)


# ----------------------------------------------------------------------------
# Fused additive-attention kernel
# ----------------------------------------------------------------------------
def _additive_attention_kernel(*refs, per_query, feat_dtype, lane_kv):
    if per_query:
        (q_ref, k_ref, v_ref, vl_ref,
         wq_ref, wk_ref, wv_ref, o_ref, qp_s, kp_s) = refs
        vl_smem = None
    else:
        (vl_smem, q_ref, k_ref, v_ref,
         wq_ref, wk_ref, wv_ref, o_ref, qp_s, kp_s) = refs
        vl_ref = None

    Bb, TQ, Dq = q_ref.shape
    _, Lk, Dk = k_ref.shape
    H = wq_ref.shape[1]
    neg_fill = jnp.float32(-1e6)     # d2l's sequence_mask fill value

    # ---- Batched projections: one MXU matmul per weight for the whole block ----
    q2 = q_ref[...].reshape(Bb * TQ, Dq)
    k2 = k_ref[...].reshape(Bb * Lk, Dk)
    qp = jnp.dot(q2, wq_ref[...],
                 preferred_element_type=jnp.float32).reshape(Bb, TQ, H)
    kp = jnp.dot(k2, wk_ref[...],
                 preferred_element_type=jnp.float32).reshape(Bb, Lk, H)

    if lane_kv:
        # Lane-dense layout: feature slab is (H, TQ, Lk), Lk on lanes,
        # weighted reduce over the leading H axis (plain vector adds).
        qp_s[...] = jnp.transpose(qp, (0, 2, 1)).astype(feat_dtype)   # (Bb, H, TQ)
        kp_s[...] = jnp.transpose(kp, (0, 2, 1)).astype(feat_dtype)   # (Bb, H, Lk)
        wv_b = wv_ref[...].reshape(H, 1, 1).astype(feat_dtype)
    else:
        qp_s[...] = qp.astype(feat_dtype)                             # (Bb, TQ, H)
        kp_s[...] = kp.astype(feat_dtype)                             # (Bb, Lk, H)
        wv_b = wv_ref[...].reshape(1, 1, H).astype(feat_dtype)

    # Hoisted once per grid step (JAX does not CSE iota/broadcasts).
    col = lax.broadcasted_iota(jnp.int32, (TQ, Lk), 1)                # (TQ, Lk)
    b0 = pl.program_id(0) * Bb

    # In-kernel loop over the batch block: bounds liveness to ONE feature slab.
    @pl.loop(0, Bb)
    def _(b):
        if lane_kv:
            feat = qp_s[b][:, :, None] + kp_s[b][:, None, :]          # (H, TQ, Lk)
            scores = jnp.sum((jnp.tanh(feat) * wv_b).astype(jnp.float32), axis=0)
        else:
            feat = qp_s[b][:, None, :] + kp_s[b][None, :, :]          # (TQ, Lk, H)
            scores = jnp.sum((jnp.tanh(feat) * wv_b).astype(jnp.float32), axis=-1)

        # masked_softmax: positions >= valid_len are filled with -1e6 pre-softmax.
        if per_query:
            vl_b = vl_ref[b]                      # (TQ, 1) int32 per-query lengths
        else:
            vl_b = vl_smem[b0 + b]                # scalar int32 from SMEM
        masked = jnp.where(col < vl_b, scores, neg_fill)

        m = jnp.max(masked, axis=-1, keepdims=True)
        p = jnp.exp(masked - m)
        inv = pl.reciprocal(jnp.sum(p, axis=-1, keepdims=True), approx=True)
        attn = p * inv

        # Dropout omitted (eval mode / p = 0.0); attn @ V on the MXU.
        o_ref[b] = jnp.dot(attn.astype(v_ref.dtype), v_ref[b],
                           preferred_element_type=jnp.float32).astype(o_ref.dtype)


# ----------------------------------------------------------------------------
# Wrapper
# ----------------------------------------------------------------------------
def additive_attention_pallas(queries, keys, values, valid_lens,
                              W_q, W_k, w_v, *, feat_dtype=None):
    """queries: (B, Lq, Dq), keys: (B, Lk, Dk), values: (B, Lk, Dv).

    valid_lens: None, (B,) int, or (B, Lq) int (d2l masked_softmax semantics).
    W_q: (Dq, H), W_k: (Dk, H) stored (in, out); w_v: (1, H) (PyTorch layout).
    """
    B, Lq, Dq = queries.shape
    Bk, Lk, Dk = keys.shape
    Bv, Lkv, Dv = values.shape
    assert B == Bk == Bv and Lk == Lkv
    H = W_q.shape[1]
    assert W_q.shape == (Dq, H) and W_k.shape == (Dk, H) and w_v.shape == (1, H)

    if feat_dtype is None:
        feat_dtype = _default_feat_dtype()
    feat_bytes = jnp.dtype(feat_dtype).itemsize
    lane_kv = Lk >= H                      # put the longer of (Lk, H) on lanes

    # Normalize valid_lens.
    per_query = (valid_lens is not None) and (jnp.ndim(valid_lens) == 2)
    if per_query:
        vl = jnp.broadcast_to(jnp.asarray(valid_lens, jnp.int32), (B, Lq))
        vl = vl.reshape(B, Lq, 1)          # VMEM per-query path (rarer case)
    else:
        if valid_lens is None:
            vl = jnp.full((B,), Lk, dtype=jnp.int32)
        else:
            vl = jnp.asarray(valid_lens, jnp.int32).reshape(B)   # SMEM scalar path

    # VMEM-aware block sizes + >=2 parallel grid steps for megacore / v7x.
    capacity = _vmem_capacity_bytes()
    Bb, TQ, fp = _choose_blocks(B, Lq, Lk, Dq, Dk, Dv, H, feat_bytes,
                                vmem_budget=int(0.6 * capacity))
    grid = (B // Bb, Lq // TQ)
    vmem_limit = int(min(0.92 * capacity, max(32 << 20, 2 * fp)))

    kernel = functools.partial(_additive_attention_kernel,
                               per_query=per_query,
                               feat_dtype=feat_dtype,
                               lane_kv=lane_kv)

    in_specs = [
        pl.BlockSpec((Bb, TQ, Dq), lambda b, q, *_: (b, q, 0)),   # queries
        pl.BlockSpec((Bb, Lk, Dk), lambda b, q, *_: (b, 0, 0)),   # keys (q-invariant)
        pl.BlockSpec((Bb, Lk, Dv), lambda b, q, *_: (b, 0, 0)),   # values (q-invariant)
    ]
    if per_query:
        in_specs.append(pl.BlockSpec((Bb, TQ, 1), lambda b, q, *_: (b, q, 0)))
    in_specs += [
        pl.BlockSpec((Dq, H), lambda b, q, *_: (0, 0)),           # W_q (resident)
        pl.BlockSpec((Dk, H), lambda b, q, *_: (0, 0)),           # W_k (resident)
        pl.BlockSpec((1, H), lambda b, q, *_: (0, 0)),            # w_v (resident)
    ]
    out_spec = pl.BlockSpec((Bb, TQ, Dv), lambda b, q, *_: (b, q, 0))

    if lane_kv:
        scratch = [pltpu.VMEM((Bb, H, TQ), feat_dtype),
                   pltpu.VMEM((Bb, H, Lk), feat_dtype)]
    else:
        scratch = [pltpu.VMEM((Bb, TQ, H), feat_dtype),
                   pltpu.VMEM((Bb, Lk, H), feat_dtype)]

    flops = (2 * B * Lq * Dq * H + 2 * B * Lk * Dk * H          # projections
             + 3 * B * Lq * Lk * H                              # add + w_v reduce
             + 2 * B * Lq * Lk * Dv                             # attn @ V
             + 5 * B * Lq * Lk)                                 # softmax misc
    transcendentals = B * Lq * Lk * H + B * Lq * Lk             # tanh + exp
    bytes_accessed = 4 * (queries.size + keys.size + values.size
                          + W_q.size + W_k.size + w_v.size + B * Lq * Dv) + 4 * vl.size

    grid_spec = pltpu.PrefetchScalarGridSpec(
        num_scalar_prefetch=0 if per_query else 1,
        grid=grid,
        in_specs=in_specs,
        out_specs=out_spec,
        scratch_shapes=scratch,
    )

    call = pl.pallas_call(
        kernel,
        out_shape=jax.ShapeDtypeStruct((B, Lq, Dv), queries.dtype),
        grid_spec=grid_spec,
        compiler_params=pltpu.CompilerParams(
            dimension_semantics=("parallel", "parallel"),
            vmem_limit_bytes=vmem_limit,
        ),
        cost_estimate=pl.CostEstimate(
            flops=flops,
            transcendentals=transcendentals,
            bytes_accessed=bytes_accessed,
        ),
    )

    if per_query:
        return call(queries, keys, values, vl, W_q, W_k, w_v)
    return call(vl, queries, keys, values, W_q, W_k, w_v)


# ----------------------------------------------------------------------------
# Module wrapper (forward only; bias-free linears; dropout is an eval-mode no-op)
# ----------------------------------------------------------------------------
class AdditiveAttentionPallas:
    def __init__(self, key_size, query_size, num_hiddens, dropout=0.0, seed=0):
        self.num_hiddens = num_hiddens
        self.dropout = dropout   # no-op at inference
        k = jax.random.PRNGKey(seed)
        kk, kq, kv = jax.random.split(k, 3)

        def init(key, din, dout):
            bound = 1.0 / math.sqrt(din)
            return jax.random.uniform(key, (din, dout), dtype=jnp.float32,
                                      minval=-bound, maxval=bound)

        # Linear weights stored as (in, out): y = x @ W == PyTorch x @ W.T.
        self.W_k = init(kk, key_size, num_hiddens)
        self.W_q = init(kq, query_size, num_hiddens)
        self.w_v = init(kv, num_hiddens, 1).reshape(1, num_hiddens)

    # TODO(synk): self.attention_weights is not materialized (kept fused in VMEM);
    #             expose it as a second kernel output if needed downstream.
    def __call__(self, queries, keys, values, valid_lens=None):
        return additive_attention_pallas(queries, keys, values, valid_lens,
                                         self.W_q, self.W_k, self.w_v)


# ----------------------------------------------------------------------------
# Pure-JAX reference (for correctness check)
# ----------------------------------------------------------------------------
def reference_forward(mod, queries, keys, values, valid_lens):
    qp = queries @ mod.W_q
    kp = keys @ mod.W_k
    feat = jnp.tanh(qp[:, :, None, :] + kp[:, None, :, :])          # (B,Lq,Lk,H)
    scores = jnp.einsum("bqkh,h->bqk", feat, mod.w_v[0])             # (B,Lq,Lk)
    if valid_lens is None:
        masked = scores
    else:
        vl = jnp.asarray(valid_lens, dtype=jnp.int32)
        if vl.ndim == 1:
            vl = jnp.broadcast_to(vl[:, None], scores.shape[:2])
        col = jnp.arange(scores.shape[-1])[None, None, :]
        masked = jnp.where(col < vl[:, :, None], scores, -1e6)
    attn = jax.nn.softmax(masked, axis=-1)
    return jnp.einsum("bqk,bkd->bqd", attn, values)


if __name__ == "__main__":
    B, Lq, Lk = 2, 8, 64
    query_size, key_size, value_dim = 16, 16, 32
    num_hiddens = 32

    key = jax.random.PRNGKey(0)
    kq, kk, kv = jax.random.split(key, 3)
    queries = jax.random.normal(kq, (B, Lq, query_size), dtype=jnp.float32)
    keys = jax.random.normal(kk, (B, Lk, key_size), dtype=jnp.float32)
    values = jax.random.normal(kv, (B, Lk, value_dim), dtype=jnp.float32)
    valid_lens = jnp.array([2, 6], dtype=jnp.int32)

    attn = AdditiveAttentionPallas(key_size, query_size, num_hiddens,
                                   dropout=0.0, seed=0)

    # bf16 feature math (v6e/v7x) and approx-reciprocal need a relaxed tolerance.
    tol = 5e-2 if _default_feat_dtype() == jnp.bfloat16 else 1e-2

    # Case 1: 1-D valid_lens (SMEM scalar path) with Lk >= H (lane-dense layout).
    out1 = jax.block_until_ready(attn(queries, keys, values, valid_lens))
    ref1 = reference_forward(attn, queries, keys, values, valid_lens)
    assert out1.shape == (B, Lq, value_dim)
    assert jnp.allclose(out1, ref1, rtol=tol, atol=tol), "case1 mismatch vs reference"

    # Case 2: 2-D per-query valid_lens (VMEM mask path) with Lk < H (lane-H layout).
    keys2, values2 = keys[:, :16, :], values[:, :16, :]
    vl2 = jnp.tile(jnp.arange(1, Lq + 1, dtype=jnp.int32)[None, :], (B, 1))
    out2 = jax.block_until_ready(attn(queries, keys2, values2, vl2))
    ref2 = reference_forward(attn, queries, keys2, values2, vl2)
    assert jnp.allclose(out2, ref2, rtol=tol, atol=tol), "case2 mismatch vs reference"

    # Case 3: valid_lens=None (plain softmax).
    out3 = jax.block_until_ready(attn(queries, keys2, values2, None))
    ref3 = reference_forward(attn, queries, keys2, values2, None)
    assert jnp.allclose(out3, ref3, rtol=tol, atol=tol), "case3 mismatch vs reference"

    print("KERNEL_OK")
</pallas_src>

<mosaic_0001>
module attributes {stable_mosaic.version = 11 : i64} {
  func.func @_additive_attention_kernel(%arg0: i32, %arg1: i32, %arg2: memref<2xi32, #tpu.memory_space<smem>>, %arg3: memref<1x8x16xf32, #tpu.memory_space<vmem>>, %arg4: memref<1x64x16xf32, #tpu.memory_space<vmem>>, %arg5: memref<1x64x32xf32, #tpu.memory_space<vmem>>, %arg6: memref<16x32xf32, #tpu.memory_space<vmem>>, %arg7: memref<16x32xf32, #tpu.memory_space<vmem>>, %arg8: memref<1x32xf32, #tpu.memory_space<vmem>>, %arg9: memref<1x8x32xf32, #tpu.memory_space<vmem>>, %arg10: memref<1x32x8xf32, #tpu.memory_space<vmem>>, %arg11: memref<1x32x64xf32, #tpu.memory_space<vmem>>) attributes {dimension_semantics = [#tpu.dimension_semantics<parallel>, #tpu.dimension_semantics<parallel>], iteration_bounds = array<i64: 2, 1>, scalar_prefetch = 1 : i64, scratch_operands = 2 : i64, tpu.core_type = #tpu.core_type<tc>, window_params = [{transform_indices = @transform_0, window_bounds = array<i64: 1, 8, 16>}, {transform_indices = @transform_1, window_bounds = array<i64: 1, 64, 16>}, {transform_indices = @transform_2, window_bounds = array<i64: 1, 64, 32>}, {pipeline_mode = #tpu.pipeline_mode<synchronous>, transform_indices = @transform_3, window_bounds = array<i64: 16, 32>}, {pipeline_mode = #tpu.pipeline_mode<synchronous>, transform_indices = @transform_4, window_bounds = array<i64: 16, 32>}, {pipeline_mode = #tpu.pipeline_mode<synchronous>, transform_indices = @transform_5, window_bounds = array<i64: 1, 32>}, {transform_indices = @transform_6, window_bounds = array<i64: 1, 8, 32>}]} {
    %c0 = arith.constant 0 : index
    %c0_0 = arith.constant 0 : index
    %c0_1 = arith.constant 0 : index
    %0 = vector.load %arg3[%c0, %c0_0, %c0_1] : memref<1x8x16xf32, #tpu.memory_space<vmem>>, vector<1x8x16xf32>
    %1 = vector.shape_cast %0 : vector<1x8x16xf32> to vector<8x16xf32>
    %c0_2 = arith.constant 0 : index
    %c0_3 = arith.constant 0 : index
    %c0_4 = arith.constant 0 : index
    %2 = vector.load %arg4[%c0_2, %c0_3, %c0_4] : memref<1x64x16xf32, #tpu.memory_space<vmem>>, vector<1x64x16xf32>
    %3 = vector.shape_cast %2 : vector<1x64x16xf32> to vector<64x16xf32>
    %c0_5 = arith.constant 0 : index
    %c0_6 = arith.constant 0 : index
    %4 = vector.load %arg6[%c0_5, %c0_6] : memref<16x32xf32, #tpu.memory_space<vmem>>, vector<16x32xf32>
    %cst = arith.constant dense<0.000000e+00> : vector<8x32xf32>
    %5 = tpu.matmul %1, %4, %cst {dimension_numbers = #tpu.dot_dimension_numbers<[1], [0], [0], [1], [0, 0, 1, 1], [], []>} : vector<8x16xf32>, vector<16x32xf32>, vector<8x32xf32> -> vector<8x32xf32>
    %6 = vector.shape_cast %5 : vector<8x32xf32> to vector<1x8x32xf32>
    %c0_7 = arith.constant 0 : index
    %c0_8 = arith.constant 0 : index
    %7 = vector.load %arg7[%c0_7, %c0_8] : memref<16x32xf32, #tpu.memory_space<vmem>>, vector<16x32xf32>
    %cst_9 = arith.constant dense<0.000000e+00> : vector<64x32xf32>
    %8 = tpu.matmul %3, %7, %cst_9 {dimension_numbers = #tpu.dot_dimension_numbers<[1], [0], [0], [1], [0, 0, 1, 1], [], []>} : vector<64x16xf32>, vector<16x32xf32>, vector<64x32xf32> -> vector<64x32xf32>
    %9 = vector.shape_cast %8 : vector<64x32xf32> to vector<1x64x32xf32>
    %10 = tpu.transpose %6, [0, 2, 1] : vector<1x8x32xf32> -> vector<1x32x8xf32>
    %c0_10 = arith.constant 0 : index
    %c0_11 = arith.constant 0 : index
    %c0_12 = arith.constant 0 : index
    %11 = vector.load %arg10[%c0_10, %c0_11, %c0_12] : memref<1x32x8xf32, #tpu.memory_space<vmem>>, vector<1x32x8xf32>
    tpu.vector_store %arg10[%c0_10, %c0_11, %c0_12], %10 {strides = array<i32>} : memref<1x32x8xf32, #tpu.memory_space<vmem>>, vector<1x32x8xf32>,
    %12 = tpu.transpose %9, [0, 2, 1] : vector<1x64x32xf32> -> vector<1x32x64xf32>
    %c0_13 = arith.constant 0 : index
    %c0_14 = arith.constant 0 : index
    %c0_15 = arith.constant 0 : index
    %13 = vector.load %arg11[%c0_13, %c0_14, %c0_15] : memref<1x32x64xf32, #tpu.memory_space<vmem>>, vector<1x32x64xf32>
    tpu.vector_store %arg11[%c0_13, %c0_14, %c0_15], %12 {strides = array<i32>} : memref<1x32x64xf32, #tpu.memory_space<vmem>>, vector<1x32x64xf32>,
    %c0_16 = arith.constant 0 : index
    %c0_17 = arith.constant 0 : index
    %14 = vector.load %arg8[%c0_16, %c0_17] : memref<1x32xf32, #tpu.memory_space<vmem>>, vector<1x32xf32>
    %15 = vector.shape_cast %14 : vector<1x32xf32> to vector<32x1x1xf32>
    %16 = tpu.iota {dimensions = array<i32: 1>} : vector<8x64xi32>
    %c1_i32 = arith.constant 1 : i32
    %17 = arith.muli %arg0, %c1_i32 : i32
    %cst_18 = arith.constant -1.000000e+06 : f32
    %c0_i32 = arith.constant 0 : i32
    %c1_i32_19 = arith.constant 1 : i32
    %18 = arith.muli %c0_i32, %c1_i32_19 : i32
    %c0_i32_20 = arith.constant 0 : i32
    %19 = arith.addi %c0_i32_20, %18 : i32
    %20 = arith.index_cast %19 : i32 to index
    %c0_21 = arith.constant 0 : index
    %c0_22 = arith.constant 0 : index
    %21 = vector.load %arg10[%20, %c0_21, %c0_22] : memref<1x32x8xf32, #tpu.memory_space<vmem>>, vector<1x32x8xf32>
    %22 = vector.shape_cast %21 : vector<1x32x8xf32> to vector<32x8xf32>
    %23 = vector.shape_cast %22 : vector<32x8xf32> to vector<32x8x1xf32>
    %24 = arith.index_cast %19 : i32 to index
    %c0_23 = arith.constant 0 : index
    %c0_24 = arith.constant 0 : index
    %25 = vector.load %arg11[%24, %c0_23, %c0_24] : memref<1x32x64xf32, #tpu.memory_space<vmem>>, vector<1x32x64xf32>
    %26 = vector.shape_cast %25 : vector<1x32x64xf32> to vector<32x64xf32>
    %27 = vector.shape_cast %26 : vector<32x64xf32> to vector<32x1x64xf32>
    %28 = vector.broadcast %23 : vector<32x8x1xf32> to vector<32x8x64xf32>
    %29 = vector.broadcast %27 : vector<32x1x64xf32> to vector<32x8x64xf32>
    %30 = arith.addf %28, %29 : vector<32x8x64xf32>
    %31 = math.tanh %30 : vector<32x8x64xf32>
    %32 = vector.broadcast %15 : vector<32x1x1xf32> to vector<32x8x64xf32>
    %33 = arith.mulf %31, %32 : vector<32x8x64xf32>
    %cst_25 = arith.constant dense<0.000000e+00> : vector<8x64xf32>
    %34 = vector.multi_reduction <add>, %33, %cst_25 [0] : vector<32x8x64xf32> to vector<8x64xf32>
    %35 = arith.addi %17, %19 : i32
    %36 = arith.index_cast %35 : i32 to index
    %37 = memref.load %arg2[%36] : memref<2xi32, #tpu.memory_space<smem>>
    %38 = vector.broadcast %37 : i32 to vector<8x64xi32>
    %39 = arith.cmpi slt, %16, %38 : vector<8x64xi32>
    %40 = vector.broadcast %cst_18 : f32 to vector<8x64xf32>
    %41 = arith.select %39, %34, %40 : vector<8x64xi1>, vector<8x64xf32>
    %cst_26 = arith.constant dense<0xFF800000> : vector<8xf32>
    %42 = vector.multi_reduction <maximumf>, %41, %cst_26 [1] : vector<8x64xf32> to vector<8xf32>
    %43 = vector.shape_cast %42 : vector<8xf32> to vector<8x1xf32>
    %44 = vector.broadcast %43 : vector<8x1xf32> to vector<8x64xf32>
    %45 = arith.subf %41, %44 : vector<8x64xf32>
    %46 = math.exp %45 : vector<8x64xf32>
    %cst_27 = arith.constant dense<0.000000e+00> : vector<8xf32>
    %47 = vector.multi_reduction <add>, %46, %cst_27 [1] : vector<8x64xf32> to vector<8xf32>
    %48 = vector.shape_cast %47 : vector<8xf32> to vector<8x1xf32>
    %49 = tpu.reciprocal %48 {approx = true} : vector<8x1xf32> -> vector<8x1xf32>
    %50 = vector.broadcast %49 : vector<8x1xf32> to vector<8x64xf32>
    %51 = arith.mulf %46, %50 : vector<8x64xf32>
    %52 = arith.index_cast %19 : i32 to index
    %c0_28 = arith.constant 0 : index
    %c0_29 = arith.constant 0 : index
    %53 = vector.load %arg5[%52, %c0_28, %c0_29] : memref<1x64x32xf32, #tpu.memory_space<vmem>>, vector<1x64x32xf32>
    %54 = vector.shape_cast %53 : vector<1x64x32xf32> to vector<64x32xf32>
    %cst_30 = arith.constant dense<0.000000e+00> : vector<8x32xf32>
    %55 = tpu.matmul %51, %54, %cst_30 {dimension_numbers = #tpu.dot_dimension_numbers<[1], [0], [0], [1], [0, 0, 1, 1], [], []>} : vector<8x64xf32>, vector<64x32xf32>, vector<8x32xf32> -> vector<8x32xf32>
    %56 = arith.index_cast %19 : i32 to index
    %c0_31 = arith.constant 0 : index
    %c0_32 = arith.constant 0 : index
    %57 = vector.load %arg9[%56, %c0_31, %c0_32] : memref<1x8x32xf32, #tpu.memory_space<vmem>>, vector<1x8x32xf32>
    %58 = vector.shape_cast %57 : vector<1x8x32xf32> to vector<8x32xf32>
    %59 = vector.shape_cast %55 : vector<8x32xf32> to vector<1x8x32xf32>
    tpu.vector_store %arg9[%56, %c0_31, %c0_32], %59 {strides = array<i32>} : memref<1x8x32xf32, #tpu.memory_space<vmem>>, vector<1x8x32xf32>,
    %c1_i32_33 = arith.constant 1 : i32
    return
  }
  func.func @transform_0(%arg0: i32, %arg1: i32, %arg2: memref<2xi32, #tpu.memory_space<smem>>) -> (i32, i32, i32) {
    %c0_i32 = arith.constant 0 : i32
    %c0_i32_0 = arith.constant 0 : i32
    return %arg0, %arg1, %c0_i32 : i32, i32, i32
  }
  func.func @transform_1(%arg0: i32, %arg1: i32, %arg2: memref<2xi32, #tpu.memory_space<smem>>) -> (i32, i32, i32) {
    %c0_i32 = arith.constant 0 : i32
    %c0_i32_0 = arith.constant 0 : i32
    %c0_i32_1 = arith.constant 0 : i32
    return %arg0, %c0_i32, %c0_i32_0 : i32, i32, i32
  }
  func.func @transform_2(%arg0: i32, %arg1: i32, %arg2: memref<2xi32, #tpu.memory_space<smem>>) -> (i32, i32, i32) {
    %c0_i32 = arith.constant 0 : i32
    %c0_i32_0 = arith.constant 0 : i32
    %c0_i32_1 = arith.constant 0 : i32
    return %arg0, %c0_i32, %c0_i32_0 : i32, i32, i32
  }
  func.func @transform_3(%arg0: i32, %arg1: i32, %arg2: memref<2xi32, #tpu.memory_space<smem>>) -> (i32, i32) {
    %c0_i32 = arith.constant 0 : i32
    %c0_i32_0 = arith.constant 0 : i32
    %c0_i32_1 = arith.constant 0 : i32
    return %c0_i32, %c0_i32_0 : i32, i32
  }
  func.func @transform_4(%arg0: i32, %arg1: i32, %arg2: memref<2xi32, #tpu.memory_space<smem>>) -> (i32, i32) {
    %c0_i32 = arith.constant 0 : i32
    %c0_i32_0 = arith.constant 0 : i32
    %c0_i32_1 = arith.constant 0 : i32
    return %c0_i32, %c0_i32_0 : i32, i32
  }
  func.func @transform_5(%arg0: i32, %arg1: i32, %arg2: memref<2xi32, #tpu.memory_space<smem>>) -> (i32, i32) {
    %c0_i32 = arith.constant 0 : i32
    %c0_i32_0 = arith.constant 0 : i32
    %c0_i32_1 = arith.constant 0 : i32
    return %c0_i32, %c0_i32_0 : i32, i32
  }
  func.func @transform_6(%arg0: i32, %arg1: i32, %arg2: memref<2xi32, #tpu.memory_space<smem>>) -> (i32, i32, i32) {
    %c0_i32 = arith.constant 0 : i32
    %c0_i32_0 = arith.constant 0 : i32
    return %arg0, %arg1, %c0_i32 : i32, i32, i32
  }
}

</mosaic_0001>

<bundles_post_ra>
// kernel: tpu_custom_call.1
= control target key start
LH: loop header
LB: loop body
LE: loop exit
PB: predicated region body
PF: predicated region fallthrough
CT: control target
= control target key end

     0   :  { %s1464_s27 = smov [#allocation5]   ;;  %s1824_s0 = inlined_call_operand.vmem [shape: s32[2], index: 0, kind: input, shape index: {}]   ;;  %s1825_s1 = inlined_call_operand.vmem [shape: f32[2,8,16], index: 1, kind: input, shape index: {}]   ;;  %s1826_s2 = inlined_call_operand.vmem [shape: f32[2,64,16], index: 2, kind: input, shape index: {}]   ;;  %s1827_s3 = inlined_call_operand.vmem [shape: f32[2,64,32], index: 3, kind: input, shape index: {}]   ;;  %s1828_s4 = inlined_call_operand.vmem [shape: f32[16,32], index: 4, kind: input, shape index: {}]   ;;  %s1829_s5 = inlined_call_operand.vmem [shape: f32[16,32], index: 5, kind: input, shape index: {}]   ;;  %s1830_s6 = inlined_call_operand.vmem [shape: f32[1,32], index: 6, kind: input, shape index: {}]   ;;  %s1831_s7 = inlined_call_operand.hbm [shape: f32[2,8,32], index: 7, kind: output, shape index: {}]  }
   0x1   :  { %s13_s26 = sshll.u32 %s1824_s0, 4  ;;  %s14_s26 = int_to_ptr.vmem [resolvable:$true] %s13_s26 }
   0x2   :  { %16 = dma.vmem_to_smem %s14_s26, 16, %s1464_s27, [#allocation4] }
   0x3   :  { %1434 = dma.done.wait [#allocation4], 16 }
   0x4   :  { %1435 = vsyncadd [#allocation4], 4294967280 }
   0x5   :  { %19 = sfence }
   0x6   :  { %20 = vsyncpa [#allocation7], 0 }
   0x7   :  { %22 = vsyncpa [#allocation7 + $0x1], 0  ;;  %s1508_s28 = smov 0   ;;  %s1510_s29 = smov 0  }
   0x8   :  { %s1512_s30 = smov 0   ;;  %s1514_s8 = smov 0  }
   0x9   :  { %s1516_s9 = smov 0   ;;  %s1518_s10 = smov 0  }
   0xa LB: > { %s1204_s0 = sadd.s32 4294967295, %s1462_s10   ;;  %s1205_s11 = sadd.s32 4294967294, %s1462_s10   ;;  %s1462_s10 = sphi %s1518_s10, %s28_s10   ;;  %s1458_s9 = sphi %s1516_s9, %s1838_s9   ;;  %s1454_s8 = sphi %s1514_s8, %s1837_s8   ;;  %s1450_s30 = sphi %s1512_s30, %s1836_s30   ;;  %s1446_s29 = sphi %s1510_s29, %s1835_s29   ;;  %s1442_s28 = sphi %s1508_s28, %s1834_s28  }
   0xb   : > { %s40_s12 = sadd.s32 1, %s1458_s9  ;;  %s192_s13 = sadd.s32 1, %s1450_s30 }
   0xc   : > { %p42_p0 = scmp.ge.s32.totalorder %s40_s12, 2  ;;  %p202_p1 = scmp.ne.s32.totalorder %s1450_s30, %s1446_s29 }
   0xd   : > { %p203_p2 = scmp.eq.s32.totalorder %s1204_s0, 1  ;;  %p208_p3 = scmp.ne.s32.totalorder %s1446_s29, %s1442_s28 }
   0xe   : > { %s1840_s12 = smov (%p42_p0, %s40_s12), 0  ;;  %p209_p5 = scmp.eq.s32.totalorder %s1205_s11, 1 }
   0xf   : > { %p1548_p4 = por %p203_p2, %p202_p1  ;;  %s187_s15 = ssub.s32 %s1458_s9, %s1840_s12 }
  0x10   : > { %p1208_p6 = scmp.ge.s32.totalorder %s1462_s10, 1  ;;  %p190_p7 = scmp.eq.s32.totalorder %s187_s15, 0 }
  0x11   : > { %p1555_p8 = por %p209_p5, %p208_p3  ;;  %p262_p9 = scmp.lt.s32.totalorder %s1462_s10, 3 }
  0x12   : > { %s1561_s17 = scalar_select %p190_p7, %s1450_s30, %s192_s13  }
  0x13   : > { %p263_p10 = pnand %p1208_p6, %p262_p9 }
  0x14   : > { %p304_p11 = scmp.lt.s32.totalorder (!%p263_p10), %s1454_s8, 1  ;;  %s1044_s24 = sld [smem:[#allocation5 + %s1454_s8]] (!%p263_p10) }
  0x15   : > { %266 = sbr.rel (%p263_p10) target bundleno = 1070 (0x42e), region = 44  ;;  %s1226_s11 = sshll.u32 (!%p263_p10), %s1454_s8, 3 }
  0x16   : > { %s1104_s18 = scalar_lea.hbm (!%p263_p10), %s1831_s7, %s1226_s11 }
  0x17   : > { %s1108_s21 = sshll.u32 (!%p263_p10), %s1104_s18, 4  ;;  %s1109_s21 = int_to_ptr.hbm [resolvable:$true] %s1108_s21 }
  0x1a   : > { %v331_v0 = vld [vmem:[%s1828_s4 + $0x8] sm:$0xff]  ;;  %v330_v1 = vld [vmem:[%s1828_s4] sm:$0xff]  ;;  %s1571_s22 = scalar_select %p304_p11, %s1454_s8, 1  ;;  %vm332_vm0 = vcmask 130048   ;;  %v499_v5 = vlaneseq  ;;  %vm455_vm1 = vcmask 64512   ;;  %vm492_vm2 = vcmask 523264  }
  0x1b   : > { %350 = vmatpush.msra.mxu0 %v331_v0  ;;  %v357_v3 = vld [vmem:[%s1829_s5 + $0x8] sm:$0xff]  ;;  %v356_v4 = vld [vmem:[%s1829_s5] sm:$0xff]  ;;  %vm1090_vm4 = vcmask 261120  }
  0x1c   : > { %s1210_s23 = sshll.u32 %s1571_s22, 3  ;;  %s1229_s27 = sshll.u32 %s1571_s22, 6  ;;  %1231 = vmatpush.msra.mxu1 %v357_v3  ;;  %1232 = vmatpush.msra.mxu3 %v357_v3  ;;  %v1591_v8 = vshrl.u32 %v499_v5, 7  ;;  %v1601_v12 = vld [vmem:[%s1830_s6] ss:$0 sm:$0xff] }
  0x1d   : > { %351 = vmatpush.msra.mxu0 %v330_v1  ;;  %s310_s26 = scalar_lea.vmem %s1825_s1, %s1210_s23  ;;  %s315_s13 = scalar_lea.vmem %s1826_s2, %s1229_s27 }
  0x1e   : > { %v321_v2 = vld [vmem:[%s310_s26] sm:$0xff]  ;;  %v324_v7 = vld [vmem:[%s315_s13 + $0x10] sm:$0xff]  ;;  %1233 = vmatpush.msra.mxu1 %v356_v4  ;;  %v327_v9 = vld [vmem:[%s315_s13 + $0x28] sm:$0xff]  ;;  %1292 = vset.pattern.permute.xlu1 %v1591_v8  ;;  %v507_v15 = vadd.s32 8, %v1591_v8  ;;  %v519_v36 = vadd.s32 24, %v1591_v8  ;;  %v513_v53 = vadd.s32 16, %v1591_v8  ;;  %s320_s0 = scalar_lea.vmem %s1827_s3, %s1229_s27 }
  0x1f   : > { %1215 = vmatmul.msk.f32.vlgmr.msra.gmra.mxu0 %vm332_vm0, %v321_v2  ;;  %v322_v6 = vld [vmem:[%s315_s13] sm:$0xff]  ;;  %1218 = vmatmul.msk.f32.vlgmr.msra.gmra.mxu1 %vm332_vm0, %v324_v7  ;;  %v323_v10 = vld [vmem:[%s315_s13 + $0x8] sm:$0xff]  ;;  %v325_v11 = vld [vmem:[%s315_s13 + $0x18] sm:$0xff]  ;;  %s301_s22 = sand.u32 1, %s1446_s29  }
  0x20   : > { %396 = vmatpush.msrb.mxu0 %v357_v3  ;;  %1234 = vmatpush.msra.mxu3 %v356_v4  ;;  %v328_v13 = vld [vmem:[%s315_s13 + $0x30] sm:$0xff]  ;;  %v326_v14 = vld [vmem:[%s315_s13 + $0x20] sm:$0xff]  ;;  %v329_v16 = vld [vmem:[%s315_s13 + $0x38] sm:$0xff]  ;;  %s1209_s27 = sshll.u32 %s301_s22, 3  ;;  %s1093_s23 = scalar_lea.sflag [#allocation7], %s301_s22 }
  0x21   : > { %1221 = vmatmul.msk.f32.vlgmr.msra.gmra.mxu3 %vm332_vm0, %v327_v9  ;;  %1296 = vset.pattern.permute.xlu2 %v1591_v8  ;;  %s303_s19 = scalar_lea.vmem [#allocation6], %s1209_s27 }
  0x22   : > { %397 = vmatpush.msrb.mxu0 %v356_v4  ;;  %s1106_s20 = sshll.u32 %s303_s19, 4  ;;  %s1107_s20 = int_to_ptr.vmem [resolvable:$true] %s1106_s20 }
  0x26   : > { %503 = vperm.xlu1 %1292, %v1601_v12  }
  0x27   : > { %1216 = vmatmul.msk.f32.vlgmr.msrb.gmra.mxu0 %vm332_vm0, %v322_v6  ;;  %1219 = vmatmul.msk.f32.gmra.mxu1 %vm332_vm0, %v325_v11 }
  0x29   : > { %1222 = vmatmul.msk.f32.gmra.mxu3 %vm332_vm0, %v328_v13 }
  0x2e   : > { %1293 = vset.pattern.permute.xlu1 %v507_v15 }
  0x2f   : > { %1217 = vmatmul.msk.f32.gmra.mxu0 %vm332_vm0, %v323_v10  ;;  %1220 = vmatmul.msk.f32.gmra.mxu1 %vm332_vm0, %v326_v14 }
  0x31   : > { %1223 = vmatmul.msk.f32.gmra.mxu3 %vm332_vm0, %v329_v16 }
  0x36   : > { %509 = vperm.xlu1 %1293, %v1601_v12  }
  0x3e   : > { %1295 = vset.pattern.permute.xlu1 %v1591_v8 }
  0x98   : > { %v1625_v51 = vpop.permute.xlu1 %503 }
  0x9c   : > { %v353_v17 = vpop.f32.mrf.mxu0  ;;  %v405_v39 = vpop.f32.mrf.mxu1 }
  0x9d   : > { %423 = vxpose.xlu0.b32.start.end [1/1] (short) (narrow) %v353_v17, 32 }
  0xa4   : > { %v399_v34 = vpop.f32.mrf.mxu0  ;;  %v408_v41 = vpop.f32.mrf.mxu1 }
  0xa5   : > { %v414_v48 = vpop.f32.mrf.mxu3 }
  0xa8   : > { %v1628_v54 = vpop.permute.xlu1 %509 }
  0xac   : > { %v402_v37 = vpop.f32.mrf.mxu0  ;;  %v411_v46 = vpop.f32.mrf.mxu1 }
  0xad   : > { %v417_v52 = vpop.f32.mrf.mxu3 }
  0xb5   : > { %v420_v55 = vpop.f32.mrf.mxu3 }
 0x104   : > { %1294 = vset.pattern.permute.xlu0 %v1591_v8 }
 0x141   : > { %v439_v18 = vpop.trf.xlu0 }
 0x142   : > { %456 = vst.msk [vmem:[#allocation2] sm:$0xff] %vm455_vm1, %v439_v18 }
 0x149   : > { %v557_v19 = vld [vmem:[#allocation2] sm:$0xff]  ;;  %v440_v20 = vpop.trf.xlu0 }
 0x14a   : > { %v582_v21 = vperm.slane %v557_v19, 3  ;;  %v568_v22 = vperm.slane %v557_v19, 1  ;;  %v561_v23 = vperm.slane %v557_v19, 0  ;;  %457 = vst.msk [vmem:[#allocation2 + $0x8] sm:$0xff] %vm455_vm1, %v440_v20  ;;  %v589_v24 = vperm.slane %v557_v19, 4 }
 0x14b   : > { %v575_v25 = vperm.slane %v557_v19, 2  ;;  %v596_v26 = vperm.slane %v557_v19, 5  ;;  %v603_v27 = vperm.slane %v557_v19, 6  ;;  %v610_v28 = vperm.slane %v557_v19, 7 }
 0x14c   : > { %587 = vperm.xlu2 %1296, %v582_v21   ;;  %573 = vperm.xlu1 %1295, %v568_v22  }
 0x14d   : > { %566 = vperm.xlu0 %1294, %v561_v23  }
 0x151   : > { %v558_v29 = vld [vmem:[#allocation2 + $0x8] sm:$0xff]  ;;  %v441_v33 = vpop.trf.xlu0 }
 0x152   : > { %v617_v30 = vperm.slane %v558_v29, 0  ;;  %v624_v31 = vperm.slane %v558_v29, 1  ;;  %v631_v32 = vperm.slane %v558_v29, 2  ;;  %458 = vst.msk [vmem:[#allocation2 + $0x10] sm:$0xff] %vm455_vm1, %v441_v33  ;;  %v638_v35 = vperm.slane %v558_v29, 3 }
 0x153   : > { %v645_v38 = vperm.slane %v558_v29, 4  ;;  %v652_v40 = vperm.slane %v558_v29, 5  ;;  %v659_v43 = vperm.slane %v558_v29, 6  ;;  %v666_v47 = vperm.slane %v558_v29, 7 }
 0x154   : > { %594 = vperm.xlu2 %1296, %v589_v24   ;;  %580 = vperm.xlu1 %1295, %v575_v25  }
 0x155   : > { %1298 = vset.pattern.permute.xlu0 %v519_v36 }
 0x159   : > { %v442_v42 = vpop.trf.xlu0  ;;  %v1620_v44 = vld [vmem:[#allocation2 + $0x10] sm:$0xff] }
 0x15a   : > { %459 = vst.msk [vmem:[#allocation2 + $0x18] sm:$0xff] %vm455_vm1, %v442_v42  ;;  %v701_v45 = vperm.slane %v1620_v44, 4  ;;  %v715_v49 = vperm.slane %v1620_v44, 6  ;;  %v673_v50 = vperm.slane %v1620_v44, 0  ;;  %v687_v61 = vperm.slane %v1620_v44, 2 }
 0x15b   : > { %v694_v0 = vperm.slane %v1620_v44, 3  ;;  %v708_v2 = vperm.slane %v1620_v44, 5  ;;  %v722_v4 = vperm.slane %v1620_v44, 7  ;;  %v680_v21 = vperm.slane %v1620_v44, 1 }
 0x15c   : > { %601 = vperm.xlu2 %1296, %v596_v26   ;;  %608 = vperm.xlu1 %1295, %v603_v27  }
 0x15d   : > { %521 = vperm.xlu0 %1298, %v1601_v12  }
 0x161   : > { %v560_v56 = vld [vmem:[#allocation2 + $0x18] sm:$0xff] }
 0x162   : > { %v729_v57 = vperm.slane %v560_v56, 0  ;;  %v743_v59 = vperm.slane %v560_v56, 2  ;;  %v771_v62 = vperm.slane %v560_v56, 6  ;;  %v736_v6 = vperm.slane %v560_v56, 1 }
 0x163   : > { %v757_v10 = vperm.slane %v560_v56, 4  ;;  %v764_v13 = vperm.slane %v560_v56, 5  ;;  %v778_v16 = vperm.slane %v560_v56, 7 }
 0x164   : > { %615 = vperm.xlu1 %1295, %v610_v28  }
 0x165   : > { %1300 = vset.pattern.permute.xlu0 %v1591_v8 }
 0x16c   : > { %622 = vperm.xlu1 %1295, %v617_v30  }
 0x16d   : > { %706 = vperm.xlu0 %1300, %v701_v45  }
 0x174   : > { %629 = vperm.xlu1 %1295, %v624_v31  }
 0x175   : > { %720 = vperm.xlu0 %1300, %v715_v49  }
 0x17c   : > { %636 = vperm.xlu1 %1295, %v631_v32  }
 0x17d   : > { %734 = vperm.xlu0 %1300, %v729_v57   ;;  %v523_v57 = vperm.slane %v1625_v51, 0 }
 0x182   : > { %460 = vxpose.xlu2.b32.start [1/8] (short) (narrow) %v399_v34, 32 }
 0x184   : > { %643 = vperm.xlu1 %1295, %v638_v35  }
 0x185   : > { %748 = vperm.xlu0 %1300, %v743_v59  }
 0x18a   : > { %461 = vxpose.xlu2.b32.cont [2/8] (short) (narrow) %v402_v37, 32 }
 0x18c   : > { %650 = vperm.xlu1 %1295, %v645_v38  }
 0x18d   : > { %776 = vperm.xlu0 %1300, %v771_v62  }
 0x192   : > { %462 = vxpose.xlu2.b32.cont [3/8] (short) (narrow) %v405_v39, 32 }
 0x194   : > { %657 = vperm.xlu1 %1295, %v652_v40  }
 0x19a   : > { %463 = vxpose.xlu2.b32.cont [4/8] (short) (narrow) %v408_v41, 32 }
 0x19c   : > { %664 = vperm.xlu1 %1295, %v659_v43  }
 0x1a2   : > { %464 = vxpose.xlu2.b32.cont [5/8] (short) (narrow) %v411_v46, 32 }
 0x1a4   : > { %671 = vperm.xlu1 %1295, %v666_v47  }
 0x1aa   : > { %465 = vxpose.xlu2.b32.cont [6/8] (short) (narrow) %v414_v48, 32 }
 0x1ac   : > { %678 = vperm.xlu1 %1295, %v673_v50  }
 0x1b2   : > { %466 = vxpose.xlu2.b32.cont [7/8] (short) (narrow) %v417_v52, 32 }
 0x1b4   : > { %1297 = vset.pattern.permute.xlu1 %v513_v53 }
 0x1ba   : > { %467 = vxpose.xlu2.b32.end [8/8] (short) (narrow) %v420_v55, 32 }
 0x1bc   : > { %515 = vperm.xlu1 %1297, %v1601_v12   ;;  %v588_v12 = vpop.permute.xlu2 %587 }
 0x1be   : > { %v574_v58 = vpop.permute.xlu1 %573 }
 0x1bf   : > { %v567_v30 = vpop.permute.xlu0 %566 }
 0x1c4   : > { %1299 = vset.pattern.permute.xlu1 %v1591_v8  ;;  %v750_v8 = vperm.slane %v560_v56, 3  ;;  %v595_v15 = vpop.permute.xlu2 %594 }
 0x1c6   : > { %v581_v60 = vpop.permute.xlu1 %580 }
 0x1cc   : > { %692 = vperm.xlu1 %1299, %v687_v61   ;;  %v602_v18 = vpop.permute.xlu2 %601 }
 0x1ce   : > { %v1633_v63 = vpop.permute.xlu1 %608 }
 0x1d4   : > { %699 = vperm.xlu1 %1299, %v694_v0  }
 0x1d6   : > { %v1636_v1 = vpop.permute.xlu1 %615 }
 0x1dc   : > { %713 = vperm.xlu1 %1299, %v708_v2  }
 0x1de   : > { %v1639_v3 = vpop.permute.xlu1 %622 }
 0x1e4   : > { %727 = vperm.xlu1 %1299, %v722_v4  }
 0x1e6   : > { %v1642_v7 = vpop.permute.xlu1 %629 }
 0x1ec   : > { %741 = vperm.xlu1 %1299, %v736_v6  }
 0x1ee   : > { %v1644_v9 = vpop.permute.xlu1 %636 }
 0x1f4   : > { %755 = vperm.xlu1 %1299, %v750_v8  }
 0x1f6   : > { %v1646_v11 = vpop.permute.xlu1 %643 }
 0x1fc   : > { %762 = vperm.xlu1 %1299, %v757_v10  }
 0x1fe   : > { %v1648_v14 = vpop.permute.xlu1 %650 }
 0x204   : > { %769 = vperm.xlu1 %1299, %v764_v13  }
 0x206   : > { %v1650_v17 = vpop.permute.xlu1 %657 }
 0x20c   : > { %783 = vperm.xlu1 %1299, %v778_v16  }
 0x20e   : > { %v1652_v19 = vpop.permute.xlu1 %664 }
 0x216   : > { %v1657_v25 = vpop.permute.xlu1 %671 }
 0x21b   : > { %v476_v20 = vpop.trf.xlu2 }
 0x21c   : > { %493 = vst.msk [vmem:[#allocation3] sm:$0xff] %vm492_vm2, %v476_v20  ;;  %v526_v20 = vperm.slane %v1625_v51, 3 }
 0x21e   : > { %v1660_v40 = vpop.permute.xlu1 %678 }
 0x223   : > { %v785_v22 = vld [vmem:[#allocation3] sm:$0xff]  ;;  %685 = vperm.xlu2 %1296, %v680_v21   ;;  %v477_v23 = vpop.trf.xlu2 }
 0x224   : > { %v793_v24 = vrot.slane %v785_v22, 1  ;;  %494 = vst.msk [vmem:[#allocation3 + $0x8] sm:$0xff] %vm492_vm2, %v477_v23  ;;  %v794_v26 = vrot.slane %v785_v22, 2  ;;  %v821_v27 = vperm.slane %v785_v22, 0  ;;  %v795_v29 = vrot.slane %v785_v22, 3 }
 0x225   : > { %v796_v31 = vrot.slane %v785_v22, 4  ;;  %v797_v35 = vrot.slane %v785_v22, 5  ;;  %v798_v42 = vrot.slane %v785_v22, 6  ;;  %v799_v44 = vrot.slane %v785_v22, 7 }
 0x226   : > { %v822_v28 = vperm.slane %v793_v24, 0  ;;  %v823_v32 = vperm.slane %v794_v26, 0  ;;  %v885_v33 = vadd.f32 %v821_v27, %v567_v30  ;;  %v824_v37 = vperm.slane %v795_v29, 0 }
 0x227   : > { %v825_v38 = vperm.slane %v796_v31, 0  ;;  %v826_v43 = vperm.slane %v797_v35, 0  ;;  %v827_v50 = vperm.slane %v798_v42, 0  ;;  %v828_v55 = vperm.slane %v799_v44, 0 }
 0x228   : > { %v886_v36 = vadd.f32 %v822_v28, %v574_v58  ;;  %v887_v39 = vadd.f32 %v823_v32, %v581_v60  ;;  %1302 = vtanh.f32 %v885_v33  ;;  %v888_v45 = vadd.f32 %v824_v37, %v588_v12 }
 0x229   : > { %v889_v47 = vadd.f32 %v825_v38, %v595_v15  ;;  %v890_v52 = vadd.f32 %v826_v43, %v602_v18  ;;  %v524_v60 = vperm.slane %v1625_v51, 1  ;;  %v891_v6 = vadd.f32 %v827_v50, %v1633_v63 }
 0x22a   : > { %1304 = vtanh.f32 %v886_v36  ;;  %v892_v10 = vadd.f32 %v828_v55, %v1636_v1  ;;  %v525_v18 = vperm.slane %v1625_v51, 2  ;;  %v528_v30 = vperm.slane %v1625_v51, 5 }
 0x22b   : > { %v478_v34 = vpop.trf.xlu2  ;;  %v1662_v41 = vld [vmem:[#allocation3 + $0x8] sm:$0xff]  ;;  %1306 = vtanh.f32 %v887_v39 }
 0x22c   : > { %495 = vst.msk [vmem:[#allocation3 + $0x10] sm:$0xff] %vm492_vm2, %v478_v34  ;;  %v801_v46 = vrot.slane %v1662_v41, 2  ;;  %v802_v49 = vrot.slane %v1662_v41, 3  ;;  %v803_v53 = vrot.slane %v1662_v41, 4  ;;  %v829_v58 = vperm.slane %v1662_v41, 0 }
 0x22d   : > { %1308 = vtanh.f32 %v888_v45  ;;  %v800_v61 = vrot.slane %v1662_v41, 1  ;;  %v804_v2 = vrot.slane %v1662_v41, 5  ;;  %v806_v43 = vrot.slane %v1662_v41, 7 }
 0x22e   : > { %v1303_v56 = vpop.eup %1302  ;;  %v831_v62 = vperm.slane %v801_v46, 0  ;;  %1310 = vtanh.f32 %v889_v47  ;;  %v1672_v0 = vpop.permute.xlu1 %515  ;;  %v832_v4 = vperm.slane %v802_v49, 0  ;;  %v833_v8 = vperm.slane %v803_v53, 0 }
 0x22f   : > { %1312 = vtanh.f32 %v890_v52  ;;  %v949_v12 = vmul.f32 %v1303_v56, %v523_v57  ;;  %v893_v15 = vadd.f32 %v829_v58, %v1639_v3  ;;  %v830_v21 = vperm.slane %v800_v61, 0 }
 0x230   : > { %v1305_v59 = vpop.eup %1304  ;;  %v895_v22 = vadd.f32 %v831_v62, %v1644_v9  ;;  %v834_v24 = vperm.slane %v804_v2, 0  ;;  %v896_v63 = vadd.f32 %v832_v4, %v1646_v11  ;;  %1314 = vtanh.f32 %v891_v6 }
 0x231   : > { %v1307_v13 = vpop.eup %1306  ;;  %v950_v16 = vmul.f32 %v1305_v59, %v524_v60  ;;  %v897_v27 = vadd.f32 %v833_v8, %v1648_v14  ;;  %1316 = vtanh.f32 %v892_v10  ;;  %v981_v28 = vsel %vm492_vm2, %v949_v12, 0.0 }
 0x232   : > { %v951_v3 = vmul.f32 %v1307_v13, %v525_v18  ;;  %1318 = vtanh.f32 %v893_v15  ;;  %v527_v9 = vperm.slane %v1625_v51, 4  ;;  %v894_v32 = vadd.f32 %v830_v21, %v1642_v7 }
 0x233   : > { %v479_v48 = vpop.trf.xlu2  ;;  %v1309_v23 = vpop.eup %1308  ;;  %v982_v26 = vsel %vm492_vm2, %v950_v16, 0.0  ;;  %1320 = vtanh.f32 %v895_v22  ;;  %v898_v33 = vadd.f32 %v834_v24, %v1650_v17  ;;  %v805_v14 = vrot.slane %v1662_v41, 6 }
 0x234   : > { %496 = vst.msk [vmem:[#allocation3 + $0x18] sm:$0xff] %vm492_vm2, %v479_v48  ;;  %v1311_v1 = vpop.eup %1310  ;;  %v983_v31 = vadd.f32 %v982_v26, %v981_v28  ;;  %v952_v11 = vmul.f32 %v1309_v23, %v526_v20  ;;  %1322 = vtanh.f32 %v896_v63  ;;  %v984_v36 = vsel %vm492_vm2, %v951_v3, 0.0 }
 0x235   : > { %v1313_v29 = vpop.eup %1312  ;;  %1324 = vtanh.f32 %v897_v27  ;;  %v953_v35 = vmul.f32 %v1311_v1, %v527_v9  ;;  %v529_v17 = vperm.slane %v1625_v51, 6  ;;  %v533_v45 = vperm.slane %v1628_v54, 2 }
 0x236   : > { %v954_v34 = vmul.f32 %v1313_v29, %v528_v30  ;;  %v1315_v37 = vpop.eup %1314  ;;  %v985_v39 = vadd.f32 %v984_v36, %v983_v31  ;;  %1326 = vtanh.f32 %v894_v32  ;;  %v986_v7 = vsel %vm492_vm2, %v952_v11, 0.0 }
 0x237   : > { %v1317_v42 = vpop.eup %1316  ;;  %1328 = vtanh.f32 %v898_v33  ;;  %v530_v48 = vperm.slane %v1625_v51, 7  ;;  %v534_v49 = vperm.slane %v1628_v54, 3  ;;  %v835_v50 = vperm.slane %v805_v14, 0 }
 0x238   : > { %v1319_v44 = vpop.eup %1318  ;;  %v987_v46 = vadd.f32 %v986_v7, %v985_v39  ;;  %v988_v52 = vsel %vm492_vm2, %v953_v35, 0.0  ;;  %v535_v41 = vperm.slane %v1628_v54, 4  ;;  %v955_v55 = vmul.f32 %v1315_v37, %v529_v17 }
 0x239   : > { %v1321_v47 = vpop.eup %1320  ;;  %v836_v59 = vperm.slane %v806_v43, 0  ;;  %v990_v61 = vsel %vm492_vm2, %v954_v34, 0.0  ;;  %v531_v62 = vperm.slane %v1628_v54, 0  ;;  %v956_v2 = vmul.f32 %v1317_v42, %v530_v48 }
 0x23a   : > { %v1323_v53 = vpop.eup %1322  ;;  %v959_v56 = vmul.f32 %v1321_v47, %v533_v45  ;;  %v989_v57 = vadd.f32 %v988_v52, %v987_v46  ;;  %v536_v8 = vperm.slane %v1628_v54, 5  ;;  %v899_v10 = vadd.f32 %v835_v50, %v1652_v19  ;;  %v787_v46 = vld [vmem:[#allocation3 + $0x10] sm:$0xff] }
 0x23b   : > { %v1325_v58 = vpop.eup %1324  ;;  %v960_v60 = vmul.f32 %v1323_v53, %v534_v49  ;;  %v532_v13 = vperm.slane %v1628_v54, 1  ;;  %v957_v15 = vmul.f32 %v1319_v44, %v531_v62  ;;  %v992_v16 = vsel %vm492_vm2, %v955_v55, 0.0  ;;  %v1721_v44 = vpop.permute.xlu0 %521 }
 0x23c   : > { %v961_v51 = vmul.f32 %v1325_v58, %v535_v41  ;;  %v991_v4 = vadd.f32 %v990_v61, %v989_v57  ;;  %v1327_v6 = vpop.eup %1326  ;;  %v900_v18 = vadd.f32 %v836_v59, %v1657_v25  ;;  %v994_v24 = vsel %vm492_vm2, %v956_v2, 0.0 }
 0x23d   : > { %v1329_v12 = vpop.eup %1328  ;;  %v958_v23 = vmul.f32 %v1327_v6, %v532_v13  ;;  %1330 = vtanh.f32 %v899_v10  ;;  %v996_v26 = vsel %vm492_vm2, %v957_v15, 0.0  ;;  %v1000_v3 = vsel %vm492_vm2, %v959_v56, 0.0 }
 0x23e   : > { %v1691_v38 = vpop.permute.xlu1 %692  ;;  %v962_v20 = vmul.f32 %v1329_v12, %v536_v8  ;;  %v993_v21 = vadd.f32 %v992_v16, %v991_v4  ;;  %1332 = vtanh.f32 %v900_v18  ;;  %v537_v25 = vperm.slane %v1628_v54, 6  ;;  %v1729_v8 = vld [vmem:[#allocation3 + $0x18] sm:$0xff] }
 0x23f   : > { %v998_v1 = vsel %vm492_vm2, %v958_v23, 0.0  ;;  %v1002_v30 = vsel %vm492_vm2, %v960_v60, 0.0  ;;  %v538_v32 = vperm.slane %v1628_v54, 7  ;;  %v1004_v34 = vsel %vm492_vm2, %v961_v51, 0.0 }
 0x240   : > { %v995_v63 = vadd.f32 %v994_v24, %v993_v21  ;;  %v1006_v36 = vsel %vm492_vm2, %v962_v20, 0.0  ;;  %v808_v47 = vrot.slane %v787_v46, 2  ;;  %v837_v48 = vperm.slane %v787_v46, 0 }
 0x241   : > { %v809_v50 = vrot.slane %v787_v46, 3  ;;  %v810_v53 = vrot.slane %v787_v46, 4  ;;  %v811_v57 = vrot.slane %v787_v46, 5  ;;  %v807_v58 = vrot.slane %v787_v46, 1 }
 0x242   : > { %v997_v19 = vadd.f32 %v996_v26, %v995_v63  ;;  %v839_v41 = vperm.slane %v808_v47, 0  ;;  %v901_v55 = vadd.f32 %v837_v48, %v1660_v40  ;;  %v812_v60 = vrot.slane %v787_v46, 6 }
 0x243   : > { %v1331_v28 = vpop.eup %1330  ;;  %v707_v54 = vpop.permute.xlu0 %706  ;;  %v840_v56 = vperm.slane %v809_v50, 0  ;;  %v841_v59 = vperm.slane %v810_v53, 0  ;;  %v842_v51 = vperm.slane %v811_v57, 0  ;;  %v813_v4 = vrot.slane %v787_v46, 7 }
 0x244   : > { %v999_v27 = vadd.f32 %v998_v1, %v997_v19  ;;  %v1333_v31 = vpop.eup %1332  ;;  %v963_v33 = vmul.f32 %v1331_v28, %v537_v25  ;;  %v903_v61 = vadd.f32 %v839_v41, %v1691_v38  ;;  %1334 = vtanh.f32 %v901_v55 }
 0x245   : > { %v964_v35 = vmul.f32 %v1333_v31, %v538_v32  ;;  %v838_v6 = vperm.slane %v807_v58, 0  ;;  %v905_v13 = vadd.f32 %v841_v59, %v707_v54  ;;  %v843_v40 = vperm.slane %v812_v60, 0 }
 0x246   : > { %v700_v22 = vpop.permute.xlu1 %699  ;;  %v1001_v29 = vadd.f32 %v1000_v3, %v999_v27  ;;  %v1008_v39 = vsel %vm492_vm2, %v963_v33, 0.0  ;;  %1336 = vtanh.f32 %v903_v61  ;;  %v539_v16 = vperm.slane %v1672_v0, 0 }
 0x247   : > { %v1010_v43 = vsel %vm492_vm2, %v964_v35, 0.0  ;;  %v904_v62 = vadd.f32 %v840_v56, %v700_v22  ;;  %v844_v20 = vperm.slane %v813_v4, 0  ;;  %v814_v21 = vrot.slane %v1729_v8, 1 }
 0x248   : > { %v1003_v9 = vadd.f32 %v1002_v30, %v1001_v29  ;;  %v815_v23 = vrot.slane %v1729_v8, 2  ;;  %v845_v24 = vperm.slane %v1729_v8, 0  ;;  %v541_v63 = vperm.slane %v1672_v0, 2 }
 0x249   : > { %1338 = vtanh.f32 %v904_v62  ;;  %v846_v27 = vperm.slane %v814_v21, 0  ;;  %v816_v3 = vrot.slane %v1729_v8, 3  ;;  %v543_v29 = vperm.slane %v1672_v0, 4 }
 0x24a   : > { %v1005_v14 = vadd.f32 %v1004_v34, %v1003_v9  ;;  %v1335_v18 = vpop.eup %1334  ;;  %v542_v25 = vperm.slane %v1672_v0, 3  ;;  %v540_v31 = vperm.slane %v1672_v0, 1  ;;  %v847_v32 = vperm.slane %v815_v23, 0 }
 0x24b   : > { %v721_v49 = vpop.permute.xlu0 %720  ;;  %v965_v26 = vmul.f32 %v1335_v18, %v539_v16  ;;  %v818_v35 = vrot.slane %v1729_v8, 5  ;;  %v545_v54 = vperm.slane %v1672_v0, 6  ;;  %v819_v47 = vrot.slane %v1729_v8, 6 }
 0x24c   : > { %v1007_v37 = vadd.f32 %v1006_v36, %v1005_v14  ;;  %v907_v22 = vadd.f32 %v843_v40, %v721_v49  ;;  %v1337_v19 = vpop.eup %1336  ;;  %v544_v56 = vperm.slane %v1672_v0, 5  ;;  %v820_v60 = vrot.slane %v1729_v8, 7 }
 0x24d   : > { %v967_v34 = vmul.f32 %v1337_v19, %v541_v63  ;;  %v1012_v36 = vsel %vm492_vm2, %v965_v26, 0.0  ;;  %v546_v40 = vperm.slane %v1672_v0, 7  ;;  %v549_v26 = vperm.slane %v1721_v44, 2 }
 0x24e   : > { %v714_v11 = vpop.permute.xlu1 %713  ;;  %v1009_v42 = vadd.f32 %v1008_v39, %v1007_v37 }
 0x24f   : > { %v906_v38 = vadd.f32 %v842_v51, %v714_v11  ;;  %v1339_v28 = vpop.eup %1338  ;;  %v817_v11 = vrot.slane %v1729_v8, 4  ;;  %v1016_v55 = vsel %vm492_vm2, %v967_v34, 0.0  ;;  %v851_v51 = vperm.slane %v819_v47, 0 }
 0x250   : > { %v1719_v7 = vadd.f32 %v1010_v43, %v1009_v42  ;;  %v848_v43 = vperm.slane %v816_v3, 0  ;;  %v968_v46 = vmul.f32 %v1339_v28, %v542_v25 }
 0x251   : > { %v849_v53 = vperm.slane %v817_v11, 0 }
 0x252   : > { %v1018_v61 = vsel %vm492_vm2, %v968_v46, 0.0 }
 0x253   : > { %v735_v2 = vpop.permute.xlu0 %734 }
 0x254   : > { %v909_v33 = vadd.f32 %v845_v24, %v735_v2 }
 0x256   : > { %v728_v17 = vpop.permute.xlu1 %727 }
 0x257   : > { %v908_v1 = vadd.f32 %v844_v20, %v728_v17  ;;  %v1013_v17 = vadd.f32 %v1012_v36, %v1719_v7 }
 0x25b   : > { %v749_v30 = vpop.permute.xlu0 %748 }
 0x25c   : > { %v911_v50 = vadd.f32 %v847_v32, %v749_v30 }
 0x25e   : > { %v1723_v45 = vpop.permute.xlu1 %741 }
 0x25f   : > { %v910_v42 = vadd.f32 %v846_v27, %v1723_v45  ;;  %v850_v45 = vperm.slane %v818_v35, 0  ;;  %v551_v35 = vperm.slane %v1721_v44, 4 }
 0x266   : > { %v1725_v52 = vpop.permute.xlu1 %755 }
 0x267   : > { %v912_v7 = vadd.f32 %v848_v43, %v1725_v52 }
 0x26e   : > { %v1731_v10 = vpop.permute.xlu1 %762 }
 0x26f   : > { %v913_v4 = vadd.f32 %v849_v53, %v1731_v10 }
 0x276   : > { %v770_v14 = vpop.permute.xlu1 %769 }
 0x277   : > { %v914_v8 = vadd.f32 %v850_v45, %v770_v14  ;;  %v556_v45 = vand.u32 127, %v499_v5  ;;  %v1066_v5 = vld [vmem:[%s320_s0 + $0x38] sm:$0xff] }
 0x278   : > { %1078 = vmatpush.msra.mxu2 %v1066_v5 }
 0x27d   : > { %v686_v12 = vpop.permute.xlu2 %685 }
 0x27e   : > { %v902_v15 = vadd.f32 %v838_v6, %v686_v12  ;;  %v547_v12 = vperm.slane %v1721_v44, 0  ;;  %v784_v10 = vpop.permute.xlu1 %783 }
 0x280   : > { %1340 = vtanh.f32 %v902_v15  ;;  %v777_v15 = vpop.permute.xlu0 %776 }
 0x281   : > { %1342 = vtanh.f32 %v905_v13  ;;  %v915_v24 = vadd.f32 %v851_v51, %v777_v15 }
 0x282   : > { %1344 = vtanh.f32 %v906_v38  ;;  %v852_v38 = vperm.slane %v820_v60, 0 }
 0x283   : > { %1346 = vtanh.f32 %v907_v22  ;;  %v548_v22 = vperm.slane %v1721_v44, 1 }
 0x284   : > { %1348 = vtanh.f32 %v908_v1  ;;  %v916_v3 = vadd.f32 %v852_v38, %v784_v10  ;;  %v1060_v38 = vld [vmem:[%s320_s0 + $0x8] sm:$0xff] }
 0x285   : > { %1350 = vtanh.f32 %v909_v33 }
 0x286   : > { %v1341_v9 = vpop.eup %1340  ;;  %1352 = vtanh.f32 %v910_v42  ;;  %v553_v42 = vperm.slane %v1721_v44, 6 }
 0x287   : > { %v966_v37 = vmul.f32 %v1341_v9, %v540_v31  ;;  %v1343_v39 = vpop.eup %1342  ;;  %1354 = vtanh.f32 %v911_v50  ;;  %v550_v9 = vperm.slane %v1721_v44, 3 }
 0x288   : > { %v1345_v49 = vpop.eup %1344  ;;  %v969_v57 = vmul.f32 %v1343_v39, %v543_v29  ;;  %1356 = vtanh.f32 %v912_v7 }
 0x289   : > { %v1014_v48 = vsel %vm492_vm2, %v966_v37, 0.0  ;;  %v1347_v58 = vpop.eup %1346  ;;  %v970_v62 = vmul.f32 %v1345_v49, %v544_v56  ;;  %1358 = vtanh.f32 %v913_v4 }
 0x28a   : > { %v1015_v41 = vadd.f32 %v1014_v48, %v1013_v17  ;;  %v1349_v2 = vpop.eup %1348  ;;  %v971_v13 = vmul.f32 %v1347_v58, %v545_v54  ;;  %v1020_v52 = vsel %vm492_vm2, %v969_v57, 0.0  ;;  %1360 = vtanh.f32 %v914_v8  ;;  %v1062_v8 = vld [vmem:[%s320_s0 + $0x18] sm:$0xff] }
 0x28b   : > { %v1351_v16 = vpop.eup %1350  ;;  %v1022_v20 = vsel %vm492_vm2, %v970_v62, 0.0  ;;  %v972_v21 = vmul.f32 %v1349_v2, %v546_v40  ;;  %1362 = vtanh.f32 %v915_v24  ;;  %v552_v17 = vperm.slane %v1721_v44, 5 }
 0x28c   : > { %v1017_v59 = vadd.f32 %v1016_v55, %v1015_v41  ;;  %v1353_v23 = vpop.eup %1352  ;;  %v1024_v0 = vsel %vm492_vm2, %v971_v13, 0.0  ;;  %v973_v19 = vmul.f32 %v1351_v16, %v547_v12  ;;  %1364 = vtanh.f32 %v916_v3  ;;  %v1063_v16 = vld [vmem:[%s320_s0 + $0x20] sm:$0xff] }
 0x28d   : > { %v1355_v1 = vpop.eup %1354  ;;  %v1026_v28 = vsel %vm492_vm2, %v972_v21, 0.0  ;;  %v974_v29 = vmul.f32 %v1353_v23, %v548_v22  ;;  %v554_v55 = vperm.slane %v1721_v44, 7  ;;  %v1065_v44 = vld [vmem:[%s320_s0 + $0x30] sm:$0xff] }
 0x28e   : > { %v1019_v6 = vadd.f32 %v1018_v61, %v1017_v59  ;;  %v1357_v25 = vpop.eup %1356  ;;  %v975_v31 = vmul.f32 %v1355_v1, %v549_v26  ;;  %v1028_v32 = vsel %vm492_vm2, %v973_v19, 0.0  ;;  %v1045_v59 = vstv %s1044_s24  ;;  %1079 = vmatpush.msra.mxu2 %v1065_v44  ;;  %s1396_s24 = sshra.s32 %s1109_s21, 4  ;;  %s1397_s24 = int_to_ptr.hbm [resolvable:$true] %s1396_s24 }
 0x28f   : > { %v1359_v11 = vpop.eup %1358  ;;  %v1030_v34 = vsel %vm492_vm2, %v974_v29, 0.0  ;;  %v976_v14 = vmul.f32 %v1357_v25, %v550_v9  ;;  %vm1046_vm3 = vcmp.lt.s32.totalorder %v556_v45, %v1045_v59  ;;  %s1398_s25 = scalar_lea.hbm %s1397_s24, 8  ;;  %p1403_p1 = scmp.lt.s32.totalorder %s1397_s24, %s1831_s7 }
 0x290   : > { %v1021_v18 = vadd.f32 %v1020_v52, %v1019_v6  ;;  %v1361_v36 = vpop.eup %1360  ;;  %v1032_v39 = vsel %vm492_vm2, %v975_v31, 0.0  ;;  %v977_v43 = vmul.f32 %v1359_v11, %v551_v35  ;;  %v1064_v6 = vld [vmem:[%s320_s0 + $0x28] sm:$0xff]  ;;  %p1399_p12 = scmp.ne.s32.totalorder %s1397_s24, %s1398_s25 }
 0x291   : > { %v1363_v54 = vpop.eup %1362  ;;  %v1034_v47 = vsel %vm492_vm2, %v976_v14, 0.0  ;;  %v978_v48 = vmul.f32 %v1361_v36, %v552_v17  ;;  %1080 = vmatpush.msra.mxu2 %v1064_v6 }
 0x292   : > { %v1023_v63 = vadd.f32 %v1022_v20, %v1021_v18  ;;  %v1365_v49 = vpop.eup %1364  ;;  %v979_v53 = vmul.f32 %v1363_v54, %v553_v42  ;;  %v1036_v41 = vsel %vm492_vm2, %v977_v43, 0.0  ;;  %v1061_v18 = vld [vmem:[%s320_s0 + $0x10] sm:$0xff]  ;;  %v1059_v20 = vld [vmem:[%s320_s0] sm:$0xff]  ;;  %p1400_p13 = pnand %p1399_p12, %p1548_p4  ;;  %s1402_s0 = scalar_lea.hbm %s1831_s7, 16 }
 0x293   : > { %v980_v57 = vmul.f32 %v1365_v49, %v554_v55  ;;  %v1038_v58 = vsel %vm492_vm2, %v978_v48, 0.0  ;;  %1081 = vmatpush.msra.mxu2 %v1063_v16  ;;  %p1404_p2 = scmp.lt.s32.totalorder %s1402_s0, %s1398_s25 }
 0x294   : > { %v1025_v27 = vadd.f32 %v1024_v0, %v1023_v63  ;;  %v1040_v60 = vsel %vm492_vm2, %v979_v53, 0.0  ;;  %p1401_p0 = pneg %p1400_p13 }
 0x295   : > { %v1042_v62 = vsel %vm492_vm2, %v980_v57, 0.0  ;;  %1082 = vmatpush.msra.mxu2 %v1062_v8  ;;  %p1405_p3 = por %p1404_p2, %p1403_p1 }
 0x296   : > { %v1027_v30 = vadd.f32 %v1026_v28, %v1025_v27 }
 0x297   : > { %1083 = vmatpush.msra.mxu2 %v1061_v18  ;;  %p1406_p5 = pnand %p1405_p3, %p1401_p0 }
 0x298   : > { %v1029_v33 = vadd.f32 %v1028_v32, %v1027_v30 }
 0x299   : > { %1084 = vmatpush.msra.mxu2 %v1060_v38 }
 0x29a   : > { %v1031_v37 = vadd.f32 %v1030_v34, %v1029_v33 }
 0x29b   : > { %1085 = vmatpush.msra.mxu2 %v1059_v20 }
 0x29c   : > { %v1033_v46 = vadd.f32 %v1032_v39, %v1031_v37 }
 0x29e   : > { %v1035_v50 = vadd.f32 %v1034_v47, %v1033_v46 }
 0x2a0   : > { %v1037_v56 = vadd.f32 %v1036_v41, %v1035_v50 }
 0x2a2   : > { %v1039_v7 = vadd.f32 %v1038_v58, %v1037_v56 }
 0x2a4   : > { %v1041_v61 = vadd.f32 %v1040_v60, %v1039_v7 }
 0x2a6   : > { %v1043_v2 = vadd.f32 %v1042_v62, %v1041_v61 }
 0x2a8   : > { %v1047_v51 = vsel %vm1046_vm3, %v1043_v2, -1000000.0 }
 0x2a9   : > { %v1048_v4 = vsel %vm492_vm2, %v1047_v51, -inf }
 0x2aa   : > { %1049 = vmax.xlane.f32.xlu1 %v1048_v4 }
 0x31d   : > { %v1050_v12 = vpop.xlane.xlu1 %1049 }
 0x31e   : > { %v1051_v13 = vsub.f32 %v1047_v51, %v1050_v12 }
 0x320   : > { %v1052_v40 = vmul.f32 1.442695, %v1051_v13 }
 0x322   : > { %1366 = vpow2.f32 %v1052_v40 }
 0x328   : > { %v1367_v15 = vpop.eup %1366 }
 0x329   : > { %v1054_v52 = vsel %vm492_vm2, %v1367_v15, 0.0 }
 0x32a   : > { %1055 = vadd.xlane.f32.xlu0 %v1054_v52 }
 0x39d   : > { %v1056_v21 = vpop.xlane.xlu0 %1055 }
 0x39e   : > { %1368 = vrcp.f32 %v1056_v21 }
 0x3a4   : > { %v1369_v22 = vpop.eup %1368 }
 0x3a5   : > { %v1058_v10 = vmul.f32 %v1369_v22, %v1367_v15 }
 0x3a7   : > { %1224 = vmatmul.msk.f32.vlgmr.msra.gmra.mxu2 %vm492_vm2, %v1058_v10 }
 0x42a   : > { %v1087_v23 = vpop.f32.mrf.mxu2 }
 0x42b   : > { %1091 = vst.msk [vmem:[%s303_s19] sm:$0xff] %vm1090_vm4, %v1087_v23 }
 0x42c   : > { %1409 = shalt.err (!%p1406_p5)
}
 0x42d   : > { %1235 = dma.vmem_to_hbm [thread:$0]  (%p1548_p4), %s1107_s20, 128, %s1109_s21, %s1093_s23  }
 0x42e PF: > { %p1241_p6 = scmp.ge.s32.totalorder %s1462_s10, 2  ;;  %s1120_s22 = sand.u32 1, %s1442_s28  }
 0x42f   : > { %s1121_s13 = scalar_lea.sflag [#allocation7], %s1120_s22 }
 0x430   : > { %p1238_p7 = pnand %p1241_p6, %p1555_p8 }
 0x432   : > { %p1239_p9 = pneg %p1238_p7 }
 0x434   : > { %1437 = dma.done.wait (%p1239_p9), %s1121_s13, 128  }
 0x435   : > { %1439 = vsyncadd (%p1239_p9), %s1121_s13, 4294967168  ;;  %s28_s10 = sadd.s32 1, %s1462_s10   ;;  %s1834_s28 = smov %s1446_s29 }
 0x436   : > { %p25_p10 = scmp.ge.s32.totalorder %s28_s10, 4   ;;  %s1835_s29 = smov %s1450_s30 }
 0x437   : > { %s1836_s30 = smov %s1561_s17  ;;  %s1837_s8 = smov %s1458_s9 }
 0x438   : > { %s1838_s9 = smov %s1840_s12  ;;  %27 = sbr.rel (!%p25_p10) target bundleno = 10 (0xa), region = 85 }
 0x43d   :  { %1127 = vsyncpa [#allocation7], 1 }
 0x43e   :  { %1129 = vsyncpa [#allocation7 + $0x1], 1 }

</bundles_post_ra>
